<compile_context>
chip_gen: v7x
topology: tpu7x:2x2x1
jax: 0.10.0
libtpu: 0.0.40
codegen_flags: <defaults>
</compile_context>

<pallas_src>
import jax
import jax.numpy as jnp
from jax.experimental import pallas as pl
from jax.experimental.pallas import tpu as pltpu


def outconv_kernel(x_ref, w_ref, b_ref, o_ref):
    # x_ref: (1, Cin, TSR, 128) VMEM   w_ref: (Cout, Cin) SMEM   b_ref: (Cout,) SMEM
    # o_ref: (1, Cout, TSR, 128) VMEM
    cin = x_ref.shape[1]
    cout = o_ref.shape[1]
    for co in range(cout):                       # unrolled: Cout is tiny and static
        acc = x_ref[0, 0].astype(jnp.float32) * w_ref[co, 0] + b_ref[co]
        for ci in range(1, cin):                 # unrolled VPU FMA chain over Cin
            acc = acc + x_ref[0, ci].astype(jnp.float32) * w_ref[co, ci]
        o_ref[0, co] = acc.astype(o_ref.dtype)


def _plan_tiles(N, SR, cin, cout, itemsize):
    """Pick the spatial row tile TSR (sublane axis) and a VMEM limit, per-generation."""
    try:
        vmem_phys = int(getattr(pltpu.get_tpu_info(), "vmem_capacity_bytes", 128 << 20))
    except Exception:
        vmem_phys = 128 << 20
    # Leave ~25% of physical VMEM as headroom for compiler scratch / temporaries.
    vmem_limit = (vmem_phys * 3) // 4
    # One in+out block pair; double buffering doubles the live footprint, so keep the
    # pair within ~1/4 of the limit: ~24 MiB on v5e/v6e, ~12 MiB on v7x (64 MiB VMEM).
    pair_budget = min(vmem_limit // 4, 24 << 20)
    bytes_per_row = 128 * (cin + cout) * itemsize
    tsr = max(1, pair_budget // bytes_per_row)
    # Guarantee >= ~8 total grid steps so the double-buffered DMA pipeline ramps
    # (grid=(N,1) would leave each of v7x's two TensorCores one fully exposed DMA).
    steps_per_batch = max(1, -(-8 // N))
    tsr = min(tsr, -(-SR // steps_per_batch))
    if SR <= 8:
        tsr = SR                                  # full-extent sublane dim is legal
    else:
        tsr = min(max(8, (tsr // 8) * 8), -(-SR // 8) * 8)
    return int(tsr), int(vmem_limit)


@jax.jit
def outconv_forward(x, weight, bias):
    """x: (N, Cin, D, H, W) NCDHW;  weight: (Cout, Cin, 1, 1, 1);  bias: (Cout,)."""
    N, Cin, D, H, W = x.shape
    Cout = weight.shape[0]
    S = D * H * W
    SR = -(-S // 128)                 # spatial rows of 128 lanes
    SP = SR * 128

    x3 = x.reshape(N, Cin, S)         # contiguous flatten: no data movement
    if SP != S:                       # pad <=127 elements so the lane axis is dense
        x3 = jnp.pad(x3, ((0, 0), (0, 0), (0, SP - S)))
    x4 = x3.reshape(N, Cin, SR, 128)
    w2 = weight.reshape(Cout, Cin)
    b1 = bias.reshape(Cout)

    TSR, vmem_limit = _plan_tiles(N, SR, Cin, Cout, x.dtype.itemsize)

    out4 = pl.pallas_call(
        outconv_kernel,
        out_shape=jax.ShapeDtypeStruct((N, Cout, SR, 128), x.dtype),
        grid=(N, pl.cdiv(SR, TSR)),
        in_specs=[
            pl.BlockSpec((1, Cin, TSR, 128), lambda n, s: (n, 0, s, 0)),
            pl.BlockSpec(memory_space=pltpu.MemorySpace.SMEM),   # weights (Cout, Cin)
            pl.BlockSpec(memory_space=pltpu.MemorySpace.SMEM),   # bias (Cout,)
        ],
        out_specs=pl.BlockSpec((1, Cout, TSR, 128), lambda n, s: (n, 0, s, 0)),
        compiler_params=pltpu.CompilerParams(
            dimension_semantics=("parallel", "parallel"),
            vmem_limit_bytes=vmem_limit,
        ),
        cost_estimate=pl.CostEstimate(
            flops=2 * N * Cout * Cin * S,
            transcendentals=0,
            bytes_accessed=(N * (Cin + Cout) * S + Cout * Cin + Cout)
            * x.dtype.itemsize,
        ),
    )(x4, w2, b1)

    out = out4.reshape(N, Cout, SP)
    if SP != S:
        out = out[:, :, :S]
    return out.reshape(N, Cout, D, H, W)


# ----------------------------------------------------------------------------
# Pure-JAX reference (mirrors the PyTorch module) for verification.
# ----------------------------------------------------------------------------
def ref_outconv(x, weight, bias):
    y = jax.lax.conv_general_dilated(
        x, weight, window_strides=(1, 1, 1), padding="VALID",
        dimension_numbers=("NCDHW", "OIDHW", "NCDHW"),
        precision=jax.lax.Precision.HIGHEST,
    )
    return y + bias.reshape(1, -1, 1, 1, 1)


if __name__ == "__main__":
    key = jax.random.PRNGKey(0)
    kx, kw, kb = jax.random.split(key, 3)

    N, Cin, D, H, W = 2, 4, 16, 16, 16
    Cout = 2  # typical OutConv: project features to number of output classes

    x = jax.random.normal(kx, (N, Cin, D, H, W), jnp.float32)
    bound = 1.0 / jnp.sqrt(jnp.float32(Cin))  # PyTorch Conv3d default init scale
    weight = jax.random.uniform(kw, (Cout, Cin, 1, 1, 1), jnp.float32, -bound, bound)
    bias = jax.random.uniform(kb, (Cout,), jnp.float32, -bound, bound)

    out = jax.block_until_ready(outconv_forward(x, weight, bias))
    ref = jax.block_until_ready(ref_outconv(x, weight, bias))

    assert out.shape == (N, Cout, D, H, W), out.shape
    max_err = float(jnp.max(jnp.abs(out - ref)))
    assert jnp.allclose(out, ref, rtol=1e-4, atol=1e-4), max_err

    print("KERNEL_OK")
</pallas_src>

<mosaic_0001>
module attributes {stable_mosaic.version = 11 : i64} {
  func.func @outconv_kernel(%arg0: i32, %arg1: i32, %arg2: memref<1x4x8x128xf32, #tpu.memory_space<vmem>>, %arg3: memref<2x4xf32, #tpu.memory_space<smem>>, %arg4: memref<2xf32, #tpu.memory_space<smem>>, %arg5: memref<1x2x8x128xf32, #tpu.memory_space<vmem>>) attributes {dimension_semantics = [#tpu.dimension_semantics<parallel>, #tpu.dimension_semantics<parallel>], iteration_bounds = array<i64: 2, 4>, scalar_prefetch = 0 : i64, scratch_operands = 0 : i64, tpu.core_type = #tpu.core_type<tc>, window_params = [{transform_indices = @transform_0, window_bounds = array<i64: 1, 4, 8, 128>}, {transform_indices = @transform_1, window_bounds = array<i64: 2, 4>}, {transform_indices = @transform_2, window_bounds = array<i64: 2>}, {transform_indices = @transform_3, window_bounds = array<i64: 1, 2, 8, 128>}]} {
    %c0 = arith.constant 0 : index
    %c0_0 = arith.constant 0 : index
    %c0_1 = arith.constant 0 : index
    %c0_2 = arith.constant 0 : index
    %0 = vector.load %arg2[%c0, %c0_0, %c0_1, %c0_2] : memref<1x4x8x128xf32, #tpu.memory_space<vmem>>, vector<1x1x8x128xf32>
    %1 = vector.shape_cast %0 : vector<1x1x8x128xf32> to vector<8x128xf32>
    %c0_3 = arith.constant 0 : index
    %c0_4 = arith.constant 0 : index
    %2 = memref.load %arg3[%c0_3, %c0_4] : memref<2x4xf32, #tpu.memory_space<smem>>
    %3 = vector.broadcast %2 : f32 to vector<8x128xf32>
    %4 = arith.mulf %1, %3 : vector<8x128xf32>
    %c0_5 = arith.constant 0 : index
    %5 = memref.load %arg4[%c0_5] : memref<2xf32, #tpu.memory_space<smem>>
    %6 = vector.broadcast %5 : f32 to vector<8x128xf32>
    %7 = arith.addf %4, %6 : vector<8x128xf32>
    %c0_6 = arith.constant 0 : index
    %c1 = arith.constant 1 : index
    %c0_7 = arith.constant 0 : index
    %c0_8 = arith.constant 0 : index
    %8 = vector.load %arg2[%c0_6, %c1, %c0_7, %c0_8] : memref<1x4x8x128xf32, #tpu.memory_space<vmem>>, vector<1x1x8x128xf32>
    %9 = vector.shape_cast %8 : vector<1x1x8x128xf32> to vector<8x128xf32>
    %c0_9 = arith.constant 0 : index
    %c1_10 = arith.constant 1 : index
    %10 = memref.load %arg3[%c0_9, %c1_10] : memref<2x4xf32, #tpu.memory_space<smem>>
    %11 = vector.broadcast %10 : f32 to vector<8x128xf32>
    %12 = arith.mulf %9, %11 : vector<8x128xf32>
    %13 = arith.addf %7, %12 : vector<8x128xf32>
    %c0_11 = arith.constant 0 : index
    %c2 = arith.constant 2 : index
    %c0_12 = arith.constant 0 : index
    %c0_13 = arith.constant 0 : index
    %14 = vector.load %arg2[%c0_11, %c2, %c0_12, %c0_13] : memref<1x4x8x128xf32, #tpu.memory_space<vmem>>, vector<1x1x8x128xf32>
    %15 = vector.shape_cast %14 : vector<1x1x8x128xf32> to vector<8x128xf32>
    %c0_14 = arith.constant 0 : index
    %c2_15 = arith.constant 2 : index
    %16 = memref.load %arg3[%c0_14, %c2_15] : memref<2x4xf32, #tpu.memory_space<smem>>
    %17 = vector.broadcast %16 : f32 to vector<8x128xf32>
    %18 = arith.mulf %15, %17 : vector<8x128xf32>
    %19 = arith.addf %13, %18 : vector<8x128xf32>
    %c0_16 = arith.constant 0 : index
    %c3 = arith.constant 3 : index
    %c0_17 = arith.constant 0 : index
    %c0_18 = arith.constant 0 : index
    %20 = vector.load %arg2[%c0_16, %c3, %c0_17, %c0_18] : memref<1x4x8x128xf32, #tpu.memory_space<vmem>>, vector<1x1x8x128xf32>
    %21 = vector.shape_cast %20 : vector<1x1x8x128xf32> to vector<8x128xf32>
    %c0_19 = arith.constant 0 : index
    %c3_20 = arith.constant 3 : index
    %22 = memref.load %arg3[%c0_19, %c3_20] : memref<2x4xf32, #tpu.memory_space<smem>>
    %23 = vector.broadcast %22 : f32 to vector<8x128xf32>
    %24 = arith.mulf %21, %23 : vector<8x128xf32>
    %25 = arith.addf %19, %24 : vector<8x128xf32>
    %c0_21 = arith.constant 0 : index
    %c0_22 = arith.constant 0 : index
    %c0_23 = arith.constant 0 : index
    %c0_24 = arith.constant 0 : index
    %26 = vector.load %arg5[%c0_21, %c0_22, %c0_23, %c0_24] : memref<1x2x8x128xf32, #tpu.memory_space<vmem>>, vector<1x1x8x128xf32>
    %27 = vector.shape_cast %26 : vector<1x1x8x128xf32> to vector<8x128xf32>
    %28 = vector.shape_cast %25 : vector<8x128xf32> to vector<1x1x8x128xf32>
    tpu.vector_store %arg5[%c0_21, %c0_22, %c0_23, %c0_24], %28 {strides = array<i32>} : memref<1x2x8x128xf32, #tpu.memory_space<vmem>>, vector<1x1x8x128xf32>,
    %c0_25 = arith.constant 0 : index
    %c0_26 = arith.constant 0 : index
    %c0_27 = arith.constant 0 : index
    %c0_28 = arith.constant 0 : index
    %29 = vector.load %arg2[%c0_25, %c0_26, %c0_27, %c0_28] : memref<1x4x8x128xf32, #tpu.memory_space<vmem>>, vector<1x1x8x128xf32>
    %30 = vector.shape_cast %29 : vector<1x1x8x128xf32> to vector<8x128xf32>
    %c1_29 = arith.constant 1 : index
    %c0_30 = arith.constant 0 : index
    %31 = memref.load %arg3[%c1_29, %c0_30] : memref<2x4xf32, #tpu.memory_space<smem>>
    %32 = vector.broadcast %31 : f32 to vector<8x128xf32>
    %33 = arith.mulf %30, %32 : vector<8x128xf32>
    %c1_31 = arith.constant 1 : index
    %34 = memref.load %arg4[%c1_31] : memref<2xf32, #tpu.memory_space<smem>>
    %35 = vector.broadcast %34 : f32 to vector<8x128xf32>
    %36 = arith.addf %33, %35 : vector<8x128xf32>
    %c0_32 = arith.constant 0 : index
    %c1_33 = arith.constant 1 : index
    %c0_34 = arith.constant 0 : index
    %c0_35 = arith.constant 0 : index
    %37 = vector.load %arg2[%c0_32, %c1_33, %c0_34, %c0_35] : memref<1x4x8x128xf32, #tpu.memory_space<vmem>>, vector<1x1x8x128xf32>
    %38 = vector.shape_cast %37 : vector<1x1x8x128xf32> to vector<8x128xf32>
    %c1_36 = arith.constant 1 : index
    %c1_37 = arith.constant 1 : index
    %39 = memref.load %arg3[%c1_36, %c1_37] : memref<2x4xf32, #tpu.memory_space<smem>>
    %40 = vector.broadcast %39 : f32 to vector<8x128xf32>
    %41 = arith.mulf %38, %40 : vector<8x128xf32>
    %42 = arith.addf %36, %41 : vector<8x128xf32>
    %c0_38 = arith.constant 0 : index
    %c2_39 = arith.constant 2 : index
    %c0_40 = arith.constant 0 : index
    %c0_41 = arith.constant 0 : index
    %43 = vector.load %arg2[%c0_38, %c2_39, %c0_40, %c0_41] : memref<1x4x8x128xf32, #tpu.memory_space<vmem>>, vector<1x1x8x128xf32>
    %44 = vector.shape_cast %43 : vector<1x1x8x128xf32> to vector<8x128xf32>
    %c1_42 = arith.constant 1 : index
    %c2_43 = arith.constant 2 : index
    %45 = memref.load %arg3[%c1_42, %c2_43] : memref<2x4xf32, #tpu.memory_space<smem>>
    %46 = vector.broadcast %45 : f32 to vector<8x128xf32>
    %47 = arith.mulf %44, %46 : vector<8x128xf32>
    %48 = arith.addf %42, %47 : vector<8x128xf32>
    %c0_44 = arith.constant 0 : index
    %c3_45 = arith.constant 3 : index
    %c0_46 = arith.constant 0 : index
    %c0_47 = arith.constant 0 : index
    %49 = vector.load %arg2[%c0_44, %c3_45, %c0_46, %c0_47] : memref<1x4x8x128xf32, #tpu.memory_space<vmem>>, vector<1x1x8x128xf32>
    %50 = vector.shape_cast %49 : vector<1x1x8x128xf32> to vector<8x128xf32>
    %c1_48 = arith.constant 1 : index
    %c3_49 = arith.constant 3 : index
    %51 = memref.load %arg3[%c1_48, %c3_49] : memref<2x4xf32, #tpu.memory_space<smem>>
    %52 = vector.broadcast %51 : f32 to vector<8x128xf32>
    %53 = arith.mulf %50, %52 : vector<8x128xf32>
    %54 = arith.addf %48, %53 : vector<8x128xf32>
    %c0_50 = arith.constant 0 : index
    %c1_51 = arith.constant 1 : index
    %c0_52 = arith.constant 0 : index
    %c0_53 = arith.constant 0 : index
    %55 = vector.load %arg5[%c0_50, %c1_51, %c0_52, %c0_53] : memref<1x2x8x128xf32, #tpu.memory_space<vmem>>, vector<1x1x8x128xf32>
    %56 = vector.shape_cast %55 : vector<1x1x8x128xf32> to vector<8x128xf32>
    %57 = vector.shape_cast %54 : vector<8x128xf32> to vector<1x1x8x128xf32>
    tpu.vector_store %arg5[%c0_50, %c1_51, %c0_52, %c0_53], %57 {strides = array<i32>} : memref<1x2x8x128xf32, #tpu.memory_space<vmem>>, vector<1x1x8x128xf32>,
    return
  }
  func.func @transform_0(%arg0: i32, %arg1: i32) -> (i32, i32, i32, i32) {
    %c0_i32 = arith.constant 0 : i32
    %c0_i32_0 = arith.constant 0 : i32
    %c0_i32_1 = arith.constant 0 : i32
    return %arg0, %c0_i32, %arg1, %c0_i32_0 : i32, i32, i32, i32
  }
  func.func @transform_1(%arg0: i32, %arg1: i32) -> (i32, i32) {
    %c0_i32 = arith.constant 0 : i32
    %c0_i32_0 = arith.constant 0 : i32
    %c0_i32_1 = arith.constant 0 : i32
    return %c0_i32, %c0_i32_0 : i32, i32
  }
  func.func @transform_2(%arg0: i32, %arg1: i32) -> i32 {
    %c0_i32 = arith.constant 0 : i32
    %c0_i32_0 = arith.constant 0 : i32
    return %c0_i32 : i32
  }
  func.func @transform_3(%arg0: i32, %arg1: i32) -> (i32, i32, i32, i32) {
    %c0_i32 = arith.constant 0 : i32
    %c0_i32_0 = arith.constant 0 : i32
    %c0_i32_1 = arith.constant 0 : i32
    return %arg0, %c0_i32, %arg1, %c0_i32_0 : i32, i32, i32, i32
  }
}

</mosaic_0001>

<bundles_post_ra>
// kernel: outconv_forward.1
= control target key start
LH: loop header
LB: loop body
LE: loop exit
PB: predicated region body
PF: predicated region fallthrough
CT: control target
= control target key end

     0   :  { %s995_s0 = inlined_call_operand.hbm [shape: f32[2,4,32,128], index: 0, kind: input, shape index: {}]   ;;  %s996_s1 = inlined_call_operand.hbm [shape: f32[2,4], index: 1, kind: input, shape index: {}]   ;;  %s997_s2 = inlined_call_operand.hbm [shape: f32[2], index: 2, kind: input, shape index: {}]   ;;  %s998_s3 = inlined_call_operand.hbm [shape: f32[2,2,32,128], index: 3, kind: output, shape index: {}]  }
   0x1   :  { %1005 = sst [smem:[#allocation16_spill]] %s996_s1 }
   0x2   :  { %1006 = sst [smem:[#allocation17_spill]] %s997_s2 }
   0x3   :  { %8 = vsyncpa [#allocation3], 0 }
   0x4   :  { %10 = vsyncpa [#allocation3 + $0x1], 0 }
   0x5   :  { %11 = vsyncpa [#allocation5], 0 }
   0x6   :  { %12 = vsyncpa [#allocation8], 0 }
   0x7   :  { %13 = vsyncpa [#allocation4], 0 }
   0x8   :  { %15 = vsyncpa [#allocation4 + $0x1], 0  ;;  %s737_s12 = smov 0   ;;  %s739_s13 = smov 0  }
   0x9   :  { %s741_s14 = smov 0   ;;  %s743_s15 = smov 0  }
   0xa   :  { %s745_s16 = smov 0   ;;  %s747_s17 = smov 0  }
   0xb   :  { %s749_s18 = smov 0   ;;  %s751_s19 = smov 0  }
   0xc LB: > { %s404_s20 = sadd.s32 4294967295, %s705_s19   ;;  %s405_s21 = sadd.s32 4294967294, %s705_s19   ;;  %s705_s19 = sphi %s751_s19, %s21_s19   ;;  %s701_s18 = sphi %s749_s18, %s1033_s18   ;;  %s697_s17 = sphi %s747_s17, %s1032_s17   ;;  %s693_s16 = sphi %s745_s16, %s1031_s16   ;;  %s689_s15 = sphi %s743_s15, %s1030_s15   ;;  %s685_s14 = sphi %s741_s14, %s1029_s14   ;;  %s681_s13 = sphi %s739_s13, %s1028_s13   ;;  %s677_s12 = sphi %s737_s12, %s1027_s12  }
   0xd   : > { %p49_p0 = scmp.ne.s32.totalorder %s685_s14, %s681_s13  ;;  %p50_p1 = scmp.eq.s32.totalorder %s705_s19, 0 }
   0xe   : > { %p55_p2 = scmp.ne.s32.totalorder %s681_s13, %s677_s12  ;;  %p785_p3 = scmp.eq.s32.totalorder %s404_s20, 0 }
   0xf   : > { %p123_p4 = scmp.eq.s32.totalorder %s404_s20, 7  ;;  %p51_p5 = por %p50_p1, %p49_p0 }
  0x10   : > { %s1007_s23 = scalar_select %p785_p3, 1, 0 }
  0x11   : > { %p129_p6 = scmp.eq.s32.totalorder %s405_s21, 7  ;;  %p791_p7 = por %p785_p3, %p55_p2 }
  0x12   : > { %p795_p8 = por %p123_p4, %p49_p0  ;;  %p406_p10 = scmp.ge.s32.totalorder %s705_s19, 1 }
  0x13   : > { %s1008_s24 = scalar_select %p791_p7, 1, 0 }
  0x14   : > { %s1009_s25 = scalar_select %p795_p8, 1, 0 }
  0x15   : > { %p799_p9 = por %p129_p6, %p55_p2  ;;  %p136_p11 = scmp.lt.s32.totalorder %s705_s19, 9 }
  0x16   : > { %p467_p13 = scmp.lt.s32.totalorder %s705_s19, 8  ;;  %p1014_p0 = scmp.ne.s32.totalorder %s1007_s23, 0 }
  0x17   : > { %s1010_s26 = scalar_select %p799_p9, 1, 0 }
  0x18   : > { %p805_p12 = pnand %p406_p10, %p136_p11  ;;  %p812_p3 = pnand %p467_p13, %p51_p5 }
  0x19   : > { %1011 = sst [smem:[#allocation14_spill]] %s1010_s26  ;;  %s30_s30 = sadd.s32 1, %s697_s17 }
  0x1a   : > { %p450_p1 = pneg %p805_p12  ;;  %p823_p2 = scmp.ge.s32.totalorder %s30_s30, 4 }
  0x1b   : > { %s1017_s1 = sld [smem:[#allocation16_spill]] }
  0x1c   : > { %p818_p4 = pnand %p450_p1, %p1014_p0 }
  0x1e   : > { %p545_p6 = pneg %p818_p4 }
  0x21   : > { %s543_s7 = scalar_lea.hbm %s1017_s1, 32 }
  0x22   : > { %p544_p5 = scmp.ne.s32.totalorder %s1017_s1, %s543_s7  ;;  %p550_p13 = scmp.lt.u32.totalorder %s543_s7, %s1017_s1 }
  0x24   : > { %p546_p10 = pnand %p545_p6, %p544_p5 }
  0x26   : > { %p547_p11 = pneg %p546_p10 }
  0x28   : > { %p552_p1 = pnand %p550_p13, %p547_p11 }
  0x2a   : > { %555 = shalt.err (!%p552_p1)
}
  0x2b   : > { %s707_s20 = smov [#allocation6]   ;;  %s1018_s2 = sld [smem:[#allocation17_spill]] }
  0x2c   : > { %453 = dma.hbm_to_smem (!%p818_p4), %s1017_s1, 32, %s707_s20, [#allocation5]  }
  0x31   : > { %s556_s9 = scalar_lea.hbm %s1018_s2, 16 }
  0x32   : > { %p557_p0 = scmp.ne.s32.totalorder %s1018_s2, %s556_s9  ;;  %p563_p11 = scmp.lt.u32.totalorder %s556_s9, %s1018_s2 }
  0x34   : > { %p559_p5 = pnand %p557_p0, %p545_p6 }
  0x36   : > { %p560_p10 = pneg %p559_p5 }
  0x38   : > { %p565_p13 = pnand %p563_p11, %p560_p10 }
  0x3a   : > { %568 = shalt.err (!%p565_p13)
}
  0x3b   : > { %s708_s11 = smov [#allocation7]   ;;  %s1035_s30 = smov (%p823_p2, %s30_s30), 0 }
  0x3c   : > { %456 = dma.hbm_to_smem (!%p818_p4), %s1018_s2, 16, %s708_s11, [#allocation8]  }
  0x3d   : > { %1019 = sst [smem:[#allocation15_spill]] %s1035_s30  ;;  %s33_s22 = sadd.s32 1, %s701_s18 }
  0x3e   : > { %s167_s26 = sand.u32 1, %s685_s14   ;;  %s1037_s22 = smov (!%p823_p2, %s33_s22), %s701_s18 }
  0x3f   : > { %s38_s29 = ssub.s32 %s697_s17, %s1035_s30  ;;  %p35_p6 = scmp.ge.s32.totalorder %s1037_s22, 2 }
  0x40   : > { %s410_s5 = sshll.u32 %s167_s26, 5  ;;  %s411_s6 = sshll.u32 %s701_s18, 4 }
  0x41   : > { %s1039_s22 = smov (%p35_p6, %s1037_s22), 0  ;;  %s176_s8 = sadd.s32 %s697_s17, %s411_s6 }
  0x42   : > { %s171_s9 = scalar_lea.vmem [#allocation2], %s410_s5  ;;  %s37_s10 = ssub.s32 %s701_s18, %s1039_s22 }
  0x43   : > { %s179_s7 = sshll.u32 %s171_s9, 4  ;;  %s412_s11 = sshll.u32 %s176_s8, 7  ;;  %s879_s7 = int_to_ptr.vmem [resolvable:$true] %s179_s7 }
  0x44   : > { %s39_s20 = sor.u32 %s38_s29, %s37_s10  ;;  %s877_s1 = scalar_lea.hbm %s995_s0, %s412_s11 }
  0x45   : > { %p40_p4 = scmp.eq.s32.totalorder %s39_s20, 0  ;;  %s1020_s2 = sadd.s32 1, %s685_s14 }
  0x46   : > { %s886_s5 = scalar_lea.sflag [#allocation3], %s167_s26  ;;  %s569_s6 = scalar_lea.hbm %s877_s1, 512 }
  0x47   : > { %s884_s30 = scalar_select %p40_p4, %s685_s14, %s1020_s2  }
  0x48   : > { %p570_p2 = scmp.ne.s32.totalorder %s877_s1, %s569_s6  ;;  %p571_p1 = pneg %p812_p3 }
  0x49   : > { %s574_s9 = scalar_lea.hbm %s995_s0, 4096  ;;  %p575_p10 = scmp.lt.u32.totalorder %s877_s1, %s995_s0 }
  0x4a   : > { %p572_p0 = pnand %p571_p1, %p570_p2  ;;  %p576_p11 = scmp.lt.u32.totalorder %s574_s9, %s569_s6 }
  0x4b   : > { %p578_p6 = scmp.lt.u32.totalorder %s569_s6, %s877_s1 }
  0x4c   : > { %p573_p5 = pneg %p572_p0  ;;  %p577_p13 = por %p576_p11, %p575_p10 }
  0x4e   : > { %p579_p4 = por %p578_p6, %p577_p13 }
  0x50   : > { %p580_p9 = pnand %p579_p4, %p573_p5 }
  0x52   : > { %583 = shalt.err (!%p580_p9)
}
  0x53   : > { %s584_s2 = scalar_lea.vmem %s879_s7, 512  ;;  %s709_s26 = smov [#allocation2]  }
  0x54   : > { %p585_p2 = scmp.ne.s32.totalorder %s879_s7, %s584_s2  ;;  %s589_s20 = sshll.u32 %s709_s26, 4  ;;  %s590_s20 = int_to_ptr.vmem [resolvable:$false] %s589_s20 }
  0x55   : > { %s591_s21 = scalar_lea.vmem %s590_s20, 1024  ;;  %p592_p7 = scmp.lt.s32.totalorder %s879_s7, %s590_s20 }
  0x56   : > { %p587_p0 = pnand %p585_p2, %p571_p1  ;;  %p593_p10 = scmp.lt.s32.totalorder %s591_s21, %s584_s2 }
  0x58   : > { %p588_p8 = pneg %p587_p0  ;;  %p594_p11 = por %p593_p10, %p592_p7 }
  0x5a   : > { %p595_p13 = pnand %p594_p11, %p588_p8 }
  0x5c   : > { %598 = shalt.err (!%p595_p13)
}
  0x5d   : > { %s710_s4 = smov 512   ;;  %s711_s6 = smov 128  }
  0x5e   : > { %s712_s29 = smov 8   ;;  %191 = sbr.rel (%p805_p12) target bundleno = 144 (0x90), region = 32 }
  0x5f   : > { %460 = dma.hbm_to_vmem [thread:$0]  (!%p812_p3), %s877_s1, 512, %s879_s7, %s886_s5, %s710_s4, %s711_s6, %s712_s29  }
  0x60   : > { %s917_s8 = sand.u32 (!%p805_p12), 1, %s681_s13   ;;  %p1021_p7 = scmp.ne.s32.totalorder (!%p805_p12), %s1008_s24, 0 }
  0x61   : > { %s414_s9 = sshll.u32 (!%p805_p12), %s917_s8, 5  ;;  %s194_s10 = scalar_lea.sflag (!%p805_p12), [#allocation3], %s917_s8 }
  0x62   : > { %s197_s11 = scalar_lea.vmem (!%p805_p12), [#allocation2], %s414_s9 }
  0x65   : > { %660 = dma.done.wait (%p1021_p7), %s194_s10, 512  }
  0x66   : > { %662 = vsyncadd (%p1021_p7), %s194_s10, 4294966784  ;;  %p1022_p8 = scmp.ne.s32.totalorder %s1007_s23, 0 }
  0x68   : > { %664 = dma.done.wait (%p1022_p8), [#allocation5], 32  }
  0x69   : > { %666 = vsyncadd (%p1022_p8), [#allocation5], 4294967264 }
  0x6a   : > { %668 = dma.done.wait (%p1022_p8), [#allocation8], 16  }
  0x6b   : > { %670 = vsyncadd (%p1022_p8), [#allocation8], 4294967280 }
  0x6c   : > { %210 = sfence }
  0x6d   : > { %s230_s1 = sld [smem:[#allocation6]]  ;;  %s419_s28 = sld [smem:[#allocation6 + $0x1]]  ;;  %v229_v0 = vld [vmem:[%s197_s11] sm:$0xff]  ;;  %v418_v2 = vld [vmem:[%s197_s11 + $0x8] sm:$0xff]  ;;  %v420_v3 = vld [vmem:[%s197_s11 + $0x10] sm:$0xff] }
  0x6e   : > { %s233_s27 = sld [smem:[#allocation7]]  ;;  %s421_s7 = sld [smem:[#allocation6 + $0x2]]  ;;  %v422_v6 = vld [vmem:[%s197_s11 + $0x18] sm:$0xff] }
  0x6f   : > { %s423_s24 = sld [smem:[#allocation6 + $0x3]]  ;;  %s424_s5 = sld [smem:[#allocation6 + $0x80]] }
  0x70   : > { %s425_s2 = sld [smem:[#allocation7 + $0x1]]  ;;  %s429_s20 = sld [smem:[#allocation6 + $0x82]] }
  0x71   : > { %s427_s26 = sld [smem:[#allocation6 + $0x81]]  ;;  %s431_s21 = sld [smem:[#allocation6 + $0x83]] }
  0x72   : > { %s417_s23 = sshll.u32 %s917_s8, 4  ;;  %s434_s4 = sshll.u32 %s693_s16, 3 }
  0x73   : > { %v231_v1 = vstv %s230_s1  ;;  %v239_v7 = vstv %s419_s28  ;;  %s291_s6 = sadd.s32 %s689_s15, %s434_s4  ;;  %s228_s29 = scalar_lea.vmem [#allocation9], %s417_s23 }
  0x74   : > { %v232_v4 = vmul.f32 %v231_v1, %v229_v0  ;;  %v234_v5 = vstv %s233_s27  ;;  %v245_v8 = vstv %s421_s7  ;;  %v240_v10 = vmul.f32 %v418_v2, %v239_v7  ;;  %s294_s9 = sshll.u32 %s228_s29, 4  ;;  %s435_s10 = sshll.u32 %s291_s6, 7  ;;  %s936_s9 = int_to_ptr.vmem [resolvable:$true] %s294_s9 }
  0x75   : > { %v246_v11 = vmul.f32 %v420_v3, %v245_v8  ;;  %v251_v12 = vstv %s423_s24  ;;  %v257_v14 = vstv %s424_s5  ;;  %s941_s1 = scalar_lea.hbm %s998_s3, %s435_s10  ;;  %s280_s15 = scalar_lea.sflag [#allocation4], %s917_s8 }
  0x76   : > { %v235_v9 = vadd.f32 %v234_v5, %v232_v4  ;;  %v252_v13 = vmul.f32 %v422_v6, %v251_v12  ;;  %v258_v16 = vmul.f32 %v257_v14, %v229_v0  ;;  %v260_v17 = vstv %s425_s2  ;;  %s599_s27 = scalar_lea.vmem %s936_s9, 256  ;;  %p1023_p9 = scmp.ne.s32.totalorder %s1009_s25, 0 }
  0x77   : > { %v264_v18 = vstv %s427_s26  ;;  %v269_v20 = vstv %s429_s20  ;;  %v274_v21 = vstv %s431_s21  ;;  %p600_p3 = scmp.ne.s32.totalorder %s936_s9, %s599_s27  ;;  %s713_s28 = smov [#allocation9]  }
  0x78   : > { %v241_v15 = vadd.f32 %v240_v10, %v235_v9  ;;  %v265_v19 = vmul.f32 %v418_v2, %v264_v18  ;;  %v261_v23 = vadd.f32 %v260_v17, %v258_v16  ;;  %v270_v24 = vmul.f32 %v420_v3, %v269_v20  ;;  %s603_s7 = sshll.u32 %s713_s28, 4  ;;  %s604_s7 = int_to_ptr.vmem [resolvable:$false] %s603_s7 }
  0x79   : > { %v275_v27 = vmul.f32 %v422_v6, %v274_v21  ;;  %p601_p12 = pnand %p600_p3, %p1023_p9  ;;  %s605_s24 = scalar_lea.vmem %s604_s7, 512 }
  0x7a   : > { %v247_v22 = vadd.f32 %v246_v11, %v241_v15  ;;  %v266_v26 = vadd.f32 %v265_v19, %v261_v23  ;;  %p606_p5 = scmp.lt.s32.totalorder %s936_s9, %s604_s7  ;;  %p607_p6 = scmp.lt.s32.totalorder %s605_s24, %s599_s27 }
  0x7b   : > { %p602_p1 = pneg %p601_p12 }
  0x7c   : > { %v253_v25 = vadd.f32 %v252_v13, %v247_v22  ;;  %v271_v28 = vadd.f32 %v270_v24, %v266_v26  ;;  %p608_p4 = por %p607_p6, %p606_p5 }
  0x7e   : > { %254 = vst [vmem:[%s228_s29] sm:$0xff] %v253_v25  ;;  %v276_v29 = vadd.f32 %v275_v27, %v271_v28  ;;  %p609_p2 = pnand %p608_p4, %p602_p1 }
  0x80   : > { %432 = vst [vmem:[%s228_s29 + $0x8] sm:$0xff] %v276_v29 }
  0x81   : > { %612 = shalt.err (!%p609_p2)
}
  0x82   : > { %s613_s5 = scalar_lea.hbm %s941_s1, 256  ;;  %s617_s20 = scalar_lea.hbm %s998_s3, 2048 }
  0x83   : > { %p614_p0 = scmp.ne.s32.totalorder %s941_s1, %s613_s5  ;;  %p618_p13 = scmp.lt.u32.totalorder %s941_s1, %s998_s3 }
  0x84   : > { %p619_p7 = scmp.lt.u32.totalorder %s617_s20, %s613_s5  ;;  %p621_p3 = scmp.lt.u32.totalorder %s613_s5, %s941_s1 }
  0x85   : > { %p615_p10 = pnand %p614_p0, %p1023_p9 }
  0x86   : > { %p620_p8 = por %p619_p7, %p618_p13 }
  0x87   : > { %p616_p11 = pneg %p615_p10 }
  0x88   : > { %p622_p12 = por %p621_p3, %p620_p8 }
  0x8a   : > { %p623_p1 = pnand %p622_p12, %p616_p11 }
  0x8c   : > { %626 = shalt.err (!%p623_p1)
}
  0x8d   : > { %s714_s4 = smov 128   ;;  %s715_s6 = smov 512  }
  0x8e   : > { %s716_s29 = smov 8  }
  0x8f   : > { %448 = dma.vmem_to_hbm [thread:$0]  (%p1023_p9), %s936_s9, 256, %s941_s1, %s280_s15, %s714_s4, %s715_s6, %s716_s29  }
  0x90 PF: > { %s1024_s10 = sld [smem:[#allocation14_spill]]  ;;  %p470_p5 = scmp.ge.s32.totalorder %s705_s19, 2 }
  0x91   : > { %s309_s16 = sand.u32 1, %s677_s12  }
  0x92   : > { %s310_s11 = scalar_lea.sflag [#allocation4], %s309_s16 }
  0x96   : > { %p1025_p6 = scmp.ne.s32.totalorder %s1024_s10, 0 }
  0x98   : > { %p462_p4 = pnand %p470_p5, %p1025_p6 }
  0x9a   : > { %672 = dma.done.wait (!%p462_p4), %s310_s11, 256  }
  0x9b   : > { %674 = vsyncadd (!%p462_p4), %s310_s11, 4294967040  ;;  %s21_s19 = sadd.s32 1, %s705_s19   ;;  %s1026_s25 = sld [smem:[#allocation15_spill]] }
  0x9c   : > { %p18_p2 = scmp.ge.s32.totalorder %s21_s19, 10   ;;  %s1027_s12 = smov %s681_s13 }
  0x9d   : > { %s1028_s13 = smov %s685_s14  ;;  %s1029_s14 = smov %s884_s30 }
  0x9e   : > { %s1030_s15 = smov %s697_s17  ;;  %s1031_s16 = smov %s701_s18 }
  0x9f   : > { %s1033_s18 = smov %s1039_s22  ;;  %20 = sbr.rel (!%p18_p2) target bundleno = 12 (0xc), region = 90 }
  0xa1   : > { %s1032_s17 = smov %s1026_s25 }
  0xa6   :  { %315 = vsyncpa [#allocation3], 1 }
  0xa7   :  { %317 = vsyncpa [#allocation3 + $0x1], 1 }
  0xa8   :  { %318 = vsyncpa [#allocation4], 1 }
  0xa9   :  { %320 = vsyncpa [#allocation4 + $0x1], 1 }
  0xaa   :  { %321 = vsyncpa [#allocation5], 1 }
  0xab   :  { %323 = vsyncpa [#allocation5 + $0x1], 1 }
  0xac   :  { %324 = vsyncpa [#allocation8], 1 }

</bundles_post_ra>
